<compile_context>
chip_gen: v7x
topology: tpu7x:2x2x1
jax: 0.10.0
libtpu: 0.0.40
codegen_flags: <defaults>
</compile_context>

<pallas_src>
import functools
import math

import numpy as np
import jax
import jax.numpy as jnp
from jax.experimental import pallas as pl
from jax.experimental.pallas import tpu as pltpu


def _round_up(v, m):
    return (v + m - 1) // m * m


# ----------------------------- Pallas kernel --------------------------------
def _mixconv_gemm_kernel(p_ref, w_ref, scale_ref, shift_ref, o_ref, acc_ref):
    """One (TM, TN) tile of SiLU(BN(patches @ W)).

    p_ref     : (TM, TK)  lane-dense im2col patch tile (compute dtype)
    w_ref     : (TK, TN)  folded conv weight tile       (compute dtype)
    scale_ref : (1, TN)   fused inference-mode BN scale (f32)
    shift_ref : (1, TN)   fused inference-mode BN shift (f32)
    o_ref     : (TM, TN)  output tile
    acc_ref   : (TM, TN)  f32 accumulator scratch, lives across the K axis
    """
    @pl.when(pl.program_id(2) == 0)
    def _init():
        acc_ref[...] = jnp.zeros_like(acc_ref)

    acc_ref[...] += jnp.dot(p_ref[...], w_ref[...],
                            preferred_element_type=jnp.float32)

    @pl.when(pl.program_id(2) == pl.num_programs(2) - 1)
    def _epilogue():
        y = acc_ref[...] * scale_ref[...] + shift_ref[...]      # BatchNorm (eval)
        y = y * jax.nn.sigmoid(y)                               # SiLU
        o_ref[...] = y.astype(o_ref.dtype)


# --------------------------- budget / tile picking ---------------------------
def _vmem_budget_bytes():
    """Generation-aware VMEM budget: ~half of physical, capped at 64 MiB
    (=> ~32 MiB on v7x's 64 MiB VMEM, 64 MiB on v5e/v6e's 128 MiB)."""
    try:
        cap = int(pltpu.get_tpu_info().vmem_capacity_bytes)
    except Exception:
        cap = 64 * 1024 * 1024                      # conservative fallback
    return int(min(max(cap // 2, 16 * 1024 * 1024), 64 * 1024 * 1024))


def _pick_tiles(M, KKP, C2P, budget_bytes, cd_bytes, out_bytes):
    """Pick (TM, TN, TK).  Every block's last dim is a multiple of 128 and
    the second-last a multiple of 8, so this size model IS the real padded
    VMEM footprint (no hidden (8,128) padding)."""
    TN = min(C2P, 256)
    TK = min(KKP, 512)
    m_cap = _round_up(max(M, 8), 8)
    for TM in (1024, 512, 256, 128, 64, 32, 16, 8):
        if TM > m_cap:
            continue
        fp = (2 * TM * TK * cd_bytes          # patches, double-buffered
              + 2 * TK * TN * cd_bytes        # weight,  double-buffered
              + 2 * TM * TN * out_bytes       # output,  double-buffered
              + TM * TN * 4                   # f32 accumulator scratch
              + 4 * TN * 4 * 2)               # BN scale / shift
        if fp + (2 << 20) <= budget_bytes:
            return TM, TN, TK
    return 8, TN, TK


# --------------------------------- wrapper -----------------------------------
def mixconv2d_forward(x_nchw, w_all, bn_scale, bn_shift, *,
                      tile_m=None, compute_dtype=jnp.bfloat16):
    """x_nchw: (N, C1, H, W).  w_all: (K, K, C1, C2) combined dense weight.

    Returns (N, C2, H, W), matching the PyTorch module's output layout.
    """
    N, C1, H, W = x_nchw.shape
    K = w_all.shape[0]
    C2 = w_all.shape[-1]
    P = K // 2

    KK = K * K * C1
    KKP = _round_up(KK, 128)                   # lane-dense contraction axis
    C2P = _round_up(C2, 128)                   # lane-dense output channels
    M = N * H * W

    cd = jnp.dtype(compute_dtype).itemsize
    out_dtype = x_nchw.dtype
    budget = _vmem_budget_bytes()
    TM, TN, TK = _pick_tiles(M, KKP, C2P, budget, cd,
                             jnp.dtype(out_dtype).itemsize)
    if tile_m is not None:
        TM = tile_m
    Mpad = _round_up(M, TM)

    # ---- wrapper-side lane-dense im2col (pure XLA pad/slice/concat in HBM) --
    # The kernel then runs a clean GEMM: no sublane-misaligned slices or
    # lane-axis concatenates inside the kernel.
    x_nhwc = jnp.transpose(x_nchw, (0, 2, 3, 1))                   # (N,H,W,C1)
    xp = jnp.pad(x_nhwc, ((0, 0), (P, P), (P, P), (0, 0)))
    taps = [xp[:, dy:dy + H, dx:dx + W, :]
            for dy in range(K) for dx in range(K)]
    patches = jnp.concatenate(taps, axis=-1).reshape(M, KK)
    patches = jnp.pad(patches, ((0, Mpad - M), (0, KKP - KK)))
    patches = patches.astype(compute_dtype)                        # (Mpad, KKP)

    # folded (im2col) weight, zero-padded to lane-dense KKP x C2P
    w_flat = jnp.pad(w_all.reshape(KK, C2), ((0, KKP - KK), (0, C2P - C2)))
    w_flat = w_flat.astype(compute_dtype)                          # (KKP, C2P)

    scale2 = jnp.pad(bn_scale.astype(jnp.float32), (0, C2P - C2)).reshape(1, C2P)
    shift2 = jnp.pad(bn_shift.astype(jnp.float32), (0, C2P - C2)).reshape(1, C2P)

    grid = (Mpad // TM, C2P // TN, KKP // TK)

    out_flat = pl.pallas_call(
        _mixconv_gemm_kernel,
        out_shape=jax.ShapeDtypeStruct((Mpad, C2P), out_dtype),
        grid_spec=pltpu.PrefetchScalarGridSpec(
            num_scalar_prefetch=0,
            grid=grid,
            in_specs=[
                pl.BlockSpec((TM, TK), lambda i, j, k: (i, k)),
                pl.BlockSpec((TK, TN), lambda i, j, k: (k, j)),
                pl.BlockSpec((1, TN), lambda i, j, k: (0, j)),
                pl.BlockSpec((1, TN), lambda i, j, k: (0, j)),
            ],
            out_specs=pl.BlockSpec((TM, TN), lambda i, j, k: (i, j)),
            scratch_shapes=[pltpu.VMEM((TM, TN), jnp.float32)],
        ),
        compiler_params=pltpu.CompilerParams(
            dimension_semantics=("parallel", "parallel", "arbitrary"),
            vmem_limit_bytes=budget),
    )(patches, w_flat, scale2, shift2)

    out = out_flat[:M, :C2].reshape(N, H, W, C2)   # drop row/channel padding
    return jnp.transpose(out, (0, 3, 1, 2))        # back to NCHW


# ------------------------- parameter construction ---------------------------
def _channel_split(c2, k, equal_ch=True):
    n = len(k)
    if equal_ch:
        i = np.floor(np.linspace(0, n - 1e-6, c2))
        c_ = [int((i == g).sum()) for g in range(n)]
    else:
        b = np.array([c2] + [0] * n, dtype=np.float64)
        a = np.eye(n + 1, n, k=-1)
        a -= np.roll(a, 1, axis=1)
        a *= np.array(k) ** 2
        a[0] = 1
        c_ = [int(v) for v in np.linalg.lstsq(a, b, rcond=None)[0].round()]
    return c_


def build_mixconv_params(key, c1, c2, k=(1, 3), equal_ch=True):
    """Deterministic synthetic parameters matching the module's shapes."""
    c_ = _channel_split(c2, k, equal_ch)
    K = max(k)

    keys = jax.random.split(key, len(k) + 4)
    branch_weights = []      # PyTorch-shaped: (c_g, c1//groups, k_g, k_g)
    w_all = np.zeros((K, K, c1, c2), np.float32)
    co_off = 0
    for g, (kg, cg) in enumerate(zip(k, c_)):
        groups = math.gcd(c1, cg)
        cin_g = c1 // groups
        cout_g = cg // groups
        wg = np.asarray(
            jax.random.normal(keys[g], (cg, cin_g, kg, kg), jnp.float32)) * 0.1
        branch_weights.append((wg, kg, cg, groups))
        off = (K - kg) // 2
        for co in range(cg):
            grp = co // cout_g
            for ci_l in range(cin_g):
                ci = grp * cin_g + ci_l
                w_all[off:off + kg, off:off + kg, ci, co_off + co] = wg[co, ci_l]
        co_off += cg
    assert co_off == c2

    kb = keys[len(k):]
    gamma = jax.random.uniform(kb[0], (c2,), jnp.float32, 0.5, 1.5)
    beta = jax.random.normal(kb[1], (c2,), jnp.float32) * 0.1
    mean = jax.random.normal(kb[2], (c2,), jnp.float32) * 0.1
    var = jax.random.uniform(kb[3], (c2,), jnp.float32, 0.5, 1.5)
    eps = 1e-5
    scale = gamma / jnp.sqrt(var + eps)
    shift = beta - mean * scale

    return (jnp.asarray(w_all), scale, shift,
            branch_weights, (gamma, beta, mean, var, eps))


# ------------------------------- reference ----------------------------------
def reference_forward(x_nchw, branch_weights, bn_params):
    gamma, beta, mean, var, eps = bn_params
    outs = []
    for wg, kg, cg, groups in branch_weights:
        y = jax.lax.conv_general_dilated(
            x_nchw, jnp.asarray(wg),
            window_strides=(1, 1),
            padding=((kg // 2, kg // 2), (kg // 2, kg // 2)),
            dimension_numbers=("NCHW", "OIHW", "NCHW"),
            feature_group_count=groups)
        outs.append(y)
    y = jnp.concatenate(outs, axis=1)
    y = (y - mean[None, :, None, None]) / jnp.sqrt(var + eps)[None, :, None, None]
    y = y * gamma[None, :, None, None] + beta[None, :, None, None]
    return y * jax.nn.sigmoid(y)


# --------------------------------- main --------------------------------------
if __name__ == "__main__":
    c1, c2 = 4, 8
    k = (1, 3)
    N, H, W = 2, 16, 16

    root = jax.random.PRNGKey(0)
    kx, kp = jax.random.split(root)
    x = jax.random.normal(kx, (N, c1, H, W), jnp.float32)   # NCHW, like PyTorch

    w_all, bn_scale, bn_shift, branch_weights, bn_params = build_mixconv_params(
        kp, c1, c2, k, equal_ch=True)

    ref = jax.block_until_ready(reference_forward(x, branch_weights, bn_params))

    # Exact f32 compute path (tile_m=128 exercises a multi-step M grid).
    out_f32 = jax.block_until_ready(
        mixconv2d_forward(x, w_all, bn_scale, bn_shift,
                          tile_m=128, compute_dtype=jnp.float32))
    np.testing.assert_allclose(np.asarray(out_f32), np.asarray(ref),
                               rtol=1e-4, atol=1e-4)
    assert out_f32.shape == (N, c2, H, W)

    # Default bf16-input / f32-accumulate path (MXU-native on v6e/v7x).
    out_bf16 = jax.block_until_ready(
        mixconv2d_forward(x, w_all, bn_scale, bn_shift))
    np.testing.assert_allclose(np.asarray(out_bf16), np.asarray(ref),
                               rtol=5e-2, atol=5e-2)
    assert out_bf16.shape == (N, c2, H, W)

    print("KERNEL_OK")
</pallas_src>

<mosaic_0001>
module attributes {stable_mosaic.version = 11 : i64} {
  func.func @_mixconv_gemm_kernel(%arg0: i32, %arg1: i32, %arg2: i32, %arg3: memref<128x128xf32, #tpu.memory_space<vmem>>, %arg4: memref<128x128xf32, #tpu.memory_space<vmem>>, %arg5: memref<1x128xf32, #tpu.memory_space<vmem>>, %arg6: memref<1x128xf32, #tpu.memory_space<vmem>>, %arg7: memref<128x128xf32, #tpu.memory_space<vmem>>, %arg8: memref<128x128xf32, #tpu.memory_space<vmem>>) attributes {dimension_semantics = [#tpu.dimension_semantics<parallel>, #tpu.dimension_semantics<parallel>, #tpu.dimension_semantics<arbitrary>], iteration_bounds = array<i64: 4, 1, 1>, scalar_prefetch = 0 : i64, scratch_operands = 1 : i64, tpu.core_type = #tpu.core_type<tc>, window_params = [{transform_indices = @transform_0, window_bounds = array<i64: 128, 128>}, {transform_indices = @transform_1, window_bounds = array<i64: 128, 128>}, {transform_indices = @transform_2, window_bounds = array<i64: 1, 128>}, {transform_indices = @transform_3, window_bounds = array<i64: 1, 128>}, {transform_indices = @transform_4, window_bounds = array<i64: 128, 128>}]} {
    %c0_i32 = arith.constant 0 : i32
    %0 = arith.cmpi eq, %arg2, %c0_i32 : i32
    %1 = arith.extui %0 : i1 to i32
    %c0_i32_0 = arith.constant 0 : i32
    %2 = arith.cmpi ne, %1, %c0_i32_0 : i32
    scf.if %2 {
      %cst_10 = arith.constant 0.000000e+00 : f32
      %12 = vector.broadcast %cst_10 : f32 to vector<128x128xf32>
      %c0_11 = arith.constant 0 : index
      %c0_12 = arith.constant 0 : index
      %13 = vector.load %arg8[%c0_11, %c0_12] : memref<128x128xf32, #tpu.memory_space<vmem>>, vector<128x128xf32>
      tpu.vector_store %arg8[%c0_11, %c0_12], %12 {strides = array<i32>} : memref<128x128xf32, #tpu.memory_space<vmem>>, vector<128x128xf32>,
    } else {
    }
    %c0 = arith.constant 0 : index
    %c0_1 = arith.constant 0 : index
    %3 = vector.load %arg8[%c0, %c0_1] : memref<128x128xf32, #tpu.memory_space<vmem>>, vector<128x128xf32>
    %c0_2 = arith.constant 0 : index
    %c0_3 = arith.constant 0 : index
    %4 = vector.load %arg3[%c0_2, %c0_3] : memref<128x128xf32, #tpu.memory_space<vmem>>, vector<128x128xf32>
    %c0_4 = arith.constant 0 : index
    %c0_5 = arith.constant 0 : index
    %5 = vector.load %arg4[%c0_4, %c0_5] : memref<128x128xf32, #tpu.memory_space<vmem>>, vector<128x128xf32>
    %cst = arith.constant dense<0.000000e+00> : vector<128x128xf32>
    %6 = tpu.matmul %4, %5, %cst {dimension_numbers = #tpu.dot_dimension_numbers<[1], [0], [0], [1], [0, 0, 1, 1], [], []>} : vector<128x128xf32>, vector<128x128xf32>, vector<128x128xf32> -> vector<128x128xf32>
    %7 = arith.addf %3, %6 : vector<128x128xf32>
    %c0_6 = arith.constant 0 : index
    %c0_7 = arith.constant 0 : index
    %8 = vector.load %arg8[%c0_6, %c0_7] : memref<128x128xf32, #tpu.memory_space<vmem>>, vector<128x128xf32>
    tpu.vector_store %arg8[%c0_6, %c0_7], %7 {strides = array<i32>} : memref<128x128xf32, #tpu.memory_space<vmem>>, vector<128x128xf32>,
    %c0_i32_8 = arith.constant 0 : i32
    %9 = arith.cmpi eq, %arg2, %c0_i32_8 : i32
    %10 = arith.extui %9 : i1 to i32
    %c0_i32_9 = arith.constant 0 : i32
    %11 = arith.cmpi ne, %10, %c0_i32_9 : i32
    scf.if %11 {
      %c0_10 = arith.constant 0 : index
      %c0_11 = arith.constant 0 : index
      %12 = vector.load %arg8[%c0_10, %c0_11] : memref<128x128xf32, #tpu.memory_space<vmem>>, vector<128x128xf32>
      %c0_12 = arith.constant 0 : index
      %c0_13 = arith.constant 0 : index
      %13 = vector.load %arg5[%c0_12, %c0_13] : memref<1x128xf32, #tpu.memory_space<vmem>>, vector<1x128xf32>
      %14 = vector.broadcast %13 : vector<1x128xf32> to vector<128x128xf32>
      %15 = arith.mulf %12, %14 : vector<128x128xf32>
      %c0_14 = arith.constant 0 : index
      %c0_15 = arith.constant 0 : index
      %16 = vector.load %arg6[%c0_14, %c0_15] : memref<1x128xf32, #tpu.memory_space<vmem>>, vector<1x128xf32>
      %17 = vector.broadcast %16 : vector<1x128xf32> to vector<128x128xf32>
      %18 = arith.addf %15, %17 : vector<128x128xf32>
      %19 = arith.negf %18 : vector<128x128xf32>
      %20 = math.exp %19 : vector<128x128xf32>
      %cst_16 = arith.constant 1.000000e+00 : f32
      %21 = vector.broadcast %cst_16 : f32 to vector<128x128xf32>
      %22 = arith.addf %21, %20 : vector<128x128xf32>
      %23 = arith.divf %21, %22 : vector<128x128xf32>
      %24 = arith.mulf %18, %23 : vector<128x128xf32>
      %c0_17 = arith.constant 0 : index
      %c0_18 = arith.constant 0 : index
      %25 = vector.load %arg7[%c0_17, %c0_18] : memref<128x128xf32, #tpu.memory_space<vmem>>, vector<128x128xf32>
      tpu.vector_store %arg7[%c0_17, %c0_18], %24 {strides = array<i32>} : memref<128x128xf32, #tpu.memory_space<vmem>>, vector<128x128xf32>,
    } else {
    }
    return
  }
  func.func @transform_0(%arg0: i32, %arg1: i32, %arg2: i32) -> (i32, i32) {
    %c0_i32 = arith.constant 0 : i32
    return %arg0, %arg2 : i32, i32
  }
  func.func @transform_1(%arg0: i32, %arg1: i32, %arg2: i32) -> (i32, i32) {
    %c0_i32 = arith.constant 0 : i32
    return %arg2, %arg1 : i32, i32
  }
  func.func @transform_2(%arg0: i32, %arg1: i32, %arg2: i32) -> (i32, i32) {
    %c0_i32 = arith.constant 0 : i32
    %c0_i32_0 = arith.constant 0 : i32
    return %c0_i32, %arg1 : i32, i32
  }
  func.func @transform_3(%arg0: i32, %arg1: i32, %arg2: i32) -> (i32, i32) {
    %c0_i32 = arith.constant 0 : i32
    %c0_i32_0 = arith.constant 0 : i32
    return %c0_i32, %arg1 : i32, i32
  }
  func.func @transform_4(%arg0: i32, %arg1: i32, %arg2: i32) -> (i32, i32) {
    %c0_i32 = arith.constant 0 : i32
    return %arg0, %arg1 : i32, i32
  }
}

</mosaic_0001>

<bundles_post_ra>
// kernel: tpu_custom_call.1
= control target key start
LH: loop header
LB: loop body
LE: loop exit
PB: predicated region body
PF: predicated region fallthrough
CT: control target
= control target key end

     0   :  { %9 = vsyncpa [#allocation4], 0  ;;  %s1740_s0 = inlined_call_operand.hbm [shape: f32[512,128], index: 0, kind: input, shape index: {}]   ;;  %s1741_s1 = inlined_call_operand.hbm [shape: f32[128,128], index: 1, kind: input, shape index: {}]   ;;  %s1742_s2 = inlined_call_operand.vmem [shape: f32[1,128], index: 2, kind: input, shape index: {}]   ;;  %s1743_s3 = inlined_call_operand.vmem [shape: f32[1,128], index: 3, kind: input, shape index: {}]   ;;  %s1744_s4 = inlined_call_operand.hbm [shape: f32[512,128], index: 4, kind: output, shape index: {}]  }
   0x1   :  { %11 = vsyncpa [#allocation4 + $0x1], 0 }
   0x2   :  { %12 = vsyncpa [#allocation7], 0 }
   0x3   :  { %13 = vsyncpa [#allocation5], 0 }
   0x4   :  { %15 = vsyncpa [#allocation5 + $0x1], 0  ;;  %s1370_s15 = smov 0   ;;  %s1372_s16 = smov 0  }
   0x5   :  { %s1374_s17 = smov 0   ;;  %s1376_s18 = smov 0  }
   0x6   :  { %s1378_s19 = smov 0   ;;  %s1380_s20 = smov 0  }
   0x7 LB: > { %s876_s21 = sadd.s32 4294967295, %s1336_s20   ;;  %s877_s22 = sadd.s32 4294967294, %s1336_s20   ;;  %s1336_s20 = sphi %s1380_s20, %s21_s20   ;;  %s1332_s19 = sphi %s1378_s19, %s1767_s19   ;;  %s1328_s18 = sphi %s1376_s18, %s1766_s18   ;;  %s1324_s17 = sphi %s1374_s17, %s1765_s17   ;;  %s1320_s16 = sphi %s1372_s16, %s1764_s16   ;;  %s1316_s15 = sphi %s1370_s15, %s1763_s15  }
   0x8   : > { %p62_p0 = scmp.ne.s32.totalorder %s1320_s16, %s1316_s15  ;;  %p1404_p1 = scmp.eq.s32.totalorder %s876_s21, 0 }
   0x9   : > { %p1408_p2 = scmp.eq.s32.totalorder %s876_s21, 3  ;;  %p174_p3 = scmp.eq.s32.totalorder %s877_s22, 3 }
   0xa   : > { %s1749_s23 = scalar_select %p1404_p1, 1, 0 }
   0xb   : > { %s1750_s24 = scalar_select %p1408_p2, 1, 0 }
   0xc   : > { %p1414_p4 = por %p1404_p1, %p62_p0  ;;  %p878_p5 = scmp.ge.s32.totalorder %s1336_s20, 1 }
   0xd   : > { %p1419_p6 = por %p174_p3, %p62_p0  ;;  %p181_p7 = scmp.lt.s32.totalorder %s1336_s20, 5 }
   0xe   : > { %s1751_s25 = scalar_select %p1414_p4, 1, 0 }
   0xf   : > { %s1752_s26 = scalar_select %p1419_p6, 1, 0 }
  0x10   : > { %p1424_p8 = pnand %p878_p5, %p181_p7  ;;  %s1338_s28 = smov [#allocation6]  }
  0x11   : > { %s197_s29 = sshll.u32 %s1338_s28, 4  ;;  %s40_s5 = sadd.s32 1, %s1332_s19  ;;  %s198_s29 = int_to_ptr.vmem [resolvable:$true] %s197_s29 }
  0x12   : > { %s1753_s27 = scalar_select %p1424_p8, 1, 0 }
  0x13   : > { %p1059_p9 = pneg %p1424_p8  ;;  %s1192_s8 = scalar_lea.hbm %s1741_s1, 2048 }
  0x14   : > { %p1193_p11 = scmp.ne.s32.totalorder %s1741_s1, %s1192_s8  ;;  %p1199_p3 = scmp.lt.u32.totalorder %s1192_s8, %s1741_s1 }
  0x15   : > { %p1432_p10 = pnand %p1059_p9, %p1404_p1 }
  0x17   : > { %p1194_p12 = pneg %p1432_p10 }
  0x19   : > { %p1195_p13 = pnand %p1194_p12, %p1193_p11 }
  0x1b   : > { %p1196_p0 = pneg %p1195_p13 }
  0x1d   : > { %p1201_p5 = pnand %p1199_p3, %p1196_p0 }
  0x1f   : > { %1204 = shalt.err (!%p1201_p5)
}
  0x20   : > { %s1205_s13 = scalar_lea.vmem %s198_s29, 2048  ;;  %p1213_p1 = scmp.lt.s32.totalorder %s198_s29, %s198_s29 }
  0x21   : > { %p1206_p7 = scmp.ne.s32.totalorder %s198_s29, %s1205_s13  ;;  %p1214_p4 = scmp.lt.s32.totalorder %s1205_s13, %s1205_s13 }
  0x23   : > { %p1208_p9 = pnand %p1206_p7, %p1194_p12  ;;  %p1215_p8 = por %p1214_p4, %p1213_p1 }
  0x25   : > { %p1209_p6 = pneg %p1208_p9 }
  0x27   : > { %p1216_p2 = pnand %p1215_p8, %p1209_p6 }
  0x29   : > { %1219 = shalt.err (!%p1216_p2)
}
  0x2a   : > { %s1339_s14 = smov 128   ;;  %s1340_s21 = smov 8  }
  0x2b   : > { %1062 = dma.hbm_to_vmem [thread:$0]  (!%p1432_p10), %s1741_s1, 2048, %s198_s29, [#allocation7], %s1339_s14, %s1339_s14, %s1340_s21  }
  0x2c   : > { %p42_p1 = scmp.ge.s32.totalorder %s40_s5, 4  ;;  %s49_s6 = sadd.s32 1, %s1324_s17 }
  0x2d   : > { %p56_p2 = scmp.ne.s32.totalorder %s1324_s17, %s1320_s16  ;;  %p57_p4 = scmp.eq.s32.totalorder %s1336_s20, 0 }
  0x2e   : > { %s1769_s5 = smov (%p42_p1, %s40_s5), 0  ;;  %p1756_p8 = scmp.ne.s32.totalorder %s1750_s24, 0 }
  0x2f   : > { %p1462_p6 = por %p57_p4, %p56_p2  ;;  %s44_s8 = ssub.s32 %s1332_s19, %s1769_s5 }
  0x30   : > { %p1468_p11 = por %p1756_p8, %p56_p2  ;;  %p1072_p12 = scmp.lt.s32.totalorder %s1336_s20, 4 }
  0x31   : > { %p47_p10 = scmp.eq.s32.totalorder %s44_s8, 0  ;;  %s223_s29 = sand.u32 1, %s1324_s17  }
  0x32   : > { %s883_s9 = sshll.u32 %s223_s29, 7  ;;  %s913_s11 = sshll.u32 %s1332_s19, 11 }
  0x33   : > { %s1477_s10 = scalar_select %p47_p10, %s1324_s17, %s49_s6  }
  0x34   : > { %s1483_s22 = scalar_lea.hbm %s1740_s0, %s913_s11  ;;  %s227_s24 = scalar_lea.vmem [#allocation3], %s883_s9 }
  0x35   : > { %s235_s28 = sshll.u32 %s227_s24, 4  ;;  %p1489_p13 = pnand %p1072_p12, %p1462_p6  ;;  %s1485_s28 = int_to_ptr.vmem [resolvable:$true] %s235_s28 }
  0x36   : > { %s1493_s6 = scalar_lea.sflag [#allocation4], %s223_s29  ;;  %s1220_s12 = scalar_lea.hbm %s1483_s22, 2048 }
  0x37   : > { %p1221_p0 = scmp.ne.s32.totalorder %s1483_s22, %s1220_s12  ;;  %p1222_p3 = pneg %p1489_p13 }
  0x38   : > { %s1225_s7 = scalar_lea.hbm %s1740_s0, 8192  ;;  %p1226_p9 = scmp.lt.u32.totalorder %s1483_s22, %s1740_s0 }
  0x39   : > { %p1223_p5 = pnand %p1222_p3, %p1221_p0  ;;  %p1227_p1 = scmp.lt.u32.totalorder %s1225_s7, %s1220_s12 }
  0x3a   : > { %p1229_p4 = scmp.lt.u32.totalorder %s1220_s12, %s1483_s22 }
  0x3b   : > { %p1224_p7 = pneg %p1223_p5  ;;  %p1228_p2 = por %p1227_p1, %p1226_p9 }
  0x3d   : > { %p1230_p6 = por %p1229_p4, %p1228_p2 }
  0x3f   : > { %p1231_p8 = pnand %p1230_p6, %p1224_p7 }
  0x41   : > { %1234 = shalt.err (!%p1231_p8)
}
  0x42   : > { %s1235_s29 = scalar_lea.vmem %s1485_s28, 2048  ;;  %s1341_s9 = smov [#allocation3]  }
  0x43   : > { %p1236_p12 = scmp.ne.s32.totalorder %s1485_s28, %s1235_s29  ;;  %s1240_s11 = sshll.u32 %s1341_s9, 4  ;;  %s1241_s11 = int_to_ptr.vmem [resolvable:$false] %s1240_s11 }
  0x44   : > { %s1242_s13 = scalar_lea.vmem %s1241_s11, 4096  ;;  %p1243_p5 = scmp.lt.s32.totalorder %s1485_s28, %s1241_s11 }
  0x45   : > { %p1238_p10 = pnand %p1236_p12, %p1222_p3  ;;  %p1244_p9 = scmp.lt.s32.totalorder %s1242_s13, %s1235_s29 }
  0x47   : > { %p1239_p0 = pneg %p1238_p10  ;;  %p1245_p1 = por %p1244_p9, %p1243_p5 }
  0x49   : > { %p1246_p2 = pnand %p1245_p1, %p1239_p0 }
  0x4b   : > { %1249 = shalt.err (!%p1246_p2)
}
  0x4c   : > { %1066 = dma.hbm_to_vmem [thread:$0]  (!%p1489_p13), %s1483_s22, 2048, %s1485_s28, %s1493_s6, %s1339_s14, %s1339_s14, %s1340_s21  }
  0x4d   : > { %p1759_p3 = scmp.ne.s32.totalorder %s1753_s27, 0 }
  0x4e   : > { %s1527_s12 = sand.u32 (!%p1759_p3), 1, %s1320_s16   ;;  %p1760_p7 = scmp.ne.s32.totalorder (!%p1759_p3), %s1751_s25, 0 }
  0x4f   : > { %247 = sbr.rel (%p1759_p3) target bundleno = 412 (0x19c), region = 36  ;;  %s887_s7 = sshll.u32 (!%p1759_p3), %s1527_s12, 7 }
  0x50   : > { %s250_s24 = scalar_lea.sflag (!%p1759_p3), [#allocation4], %s1527_s12  ;;  %s1533_s8 = scalar_lea.vmem (!%p1759_p3), [#allocation3], %s887_s7 }
  0x56   : > { %1303 = dma.done.wait (%p1760_p7), %s250_s24, 2048  }
  0x57   : > { %1305 = vsyncadd (%p1760_p7), %s250_s24, 4294965248  ;;  %p1761_p13 = scmp.ne.s32.totalorder %s1749_s23, 0 }
  0x59   : > { %1307 = dma.done.wait (%p1761_p13), [#allocation7], 2048  }
  0x5a   : > { %1309 = vsyncadd (%p1761_p13), [#allocation7], 4294965248  ;;  %v349_v0 = vld [vmem:[#allocation6] sm:$0xff]  ;;  %v350_v1 = vld [vmem:[#allocation6 + $0x8] sm:$0xff]  ;;  %s1653_s21 = scalar_lea.vmem [#allocation8], %s887_s7  ;;  %s914_s22 = sshll.u32 %s1328_s18, 11 }
  0x5b   : > { %v351_v2 = vld [vmem:[#allocation6 + $0x10] sm:$0xff]  ;;  %v1003_v3 = vpack.c.bf16 %v350_v1, %v349_v0  ;;  %v352_v4 = vld [vmem:[#allocation6 + $0x18] sm:$0xff]  ;;  %v353_v6 = vld [vmem:[#allocation6 + $0x20] sm:$0xff]  ;;  %s750_s28 = sshll.u32 %s1653_s21, 4  ;;  %s1686_s9 = scalar_lea.hbm %s1744_s4, %s914_s22  ;;  %s1688_s28 = int_to_ptr.vmem [resolvable:$true] %s750_s28 }
  0x5c   : > { %v1007_v5 = vpack.c.bf16 %v352_v4, %v351_v2  ;;  %v354_v7 = vld [vmem:[#allocation6 + $0x28] sm:$0xff]  ;;  %v333_v9 = vld [vmem:[%s1533_s8] sm:$0xff]  ;;  %v355_v11 = vld [vmem:[#allocation6 + $0x30] sm:$0xff]  ;;  %s736_s18 = scalar_lea.sflag [#allocation5], %s1527_s12  ;;  %s1250_s11 = scalar_lea.vmem %s1688_s28, 2048 }
  0x5d   : > { %1004 = vmatprep.subr.bf16.mxu0 %v1003_v3  ;;  %1035 = vmatprep.subr.bf16.mxu1 %v1003_v3  ;;  %v1011_v8 = vpack.c.bf16 %v354_v7, %v353_v6  ;;  %v341_v10 = vld [vmem:[%s1533_s8 + $0x40] sm:$0xff]  ;;  %v356_v12 = vld [vmem:[#allocation6 + $0x38] sm:$0xff]  ;;  %v358_v15 = vld [vmem:[#allocation6 + $0x48] sm:$0xff]  ;;  %p1251_p4 = scmp.ne.s32.totalorder %s1688_s28, %s1250_s11  ;;  %s1342_s13 = smov [#allocation8]  }
  0x5e   : > { %1006 = vmatpush3.bf16.msra.mxu0 %v1003_v3  ;;  %1043 = vmatpush3.bf16.msra.mxu1 %v1003_v3  ;;  %v1015_v13 = vpack.c.bf16 %v356_v12, %v355_v11  ;;  %v357_v14 = vld [vmem:[#allocation6 + $0x40] sm:$0xff]  ;;  %v359_v17 = vld [vmem:[#allocation6 + $0x50] sm:$0xff]  ;;  %v360_v18 = vld [vmem:[#allocation6 + $0x58] sm:$0xff]  ;;  %s1254_s7 = sshll.u32 %s1342_s13, 4  ;;  %s1255_s7 = int_to_ptr.vmem [resolvable:$false] %s1254_s7 }
  0x5f   : > { %1008 = vmatprep.subr.bf16.mxu0 %v1007_v5  ;;  %1036 = vmatprep.subr.bf16.mxu1 %v1007_v5  ;;  %v1019_v16 = vpack.c.bf16 %v358_v15, %v357_v14  ;;  %v1023_v19 = vpack.c.bf16 %v360_v18, %v359_v17  ;;  %v361_v20 = vld [vmem:[#allocation6 + $0x60] sm:$0xff]  ;;  %v362_v21 = vld [vmem:[#allocation6 + $0x68] sm:$0xff]  ;;  %v363_v23 = vld [vmem:[#allocation6 + $0x70] sm:$0xff]  ;;  %p1252_p6 = pnand %p1251_p4, %p1468_p11  ;;  %s1256_s24 = scalar_lea.vmem %s1255_s7, 4096 }
  0x60   : > { %979 = vmatprep.mubr.f32.mxu0 %v333_v9  ;;  %991 = vmatprep.mubr.f32.mxu1 %v341_v10  ;;  %v1027_v22 = vpack.c.bf16 %v362_v21, %v361_v20  ;;  %v364_v24 = vld [vmem:[#allocation6 + $0x78] sm:$0xff]  ;;  %v334_v26 = vld [vmem:[%s1533_s8 + $0x8] sm:$0xff]  ;;  %v335_v28 = vld [vmem:[%s1533_s8 + $0x10] sm:$0xff]  ;;  %p1257_p12 = scmp.lt.s32.totalorder %s1688_s28, %s1255_s7  ;;  %p1258_p10 = scmp.lt.s32.totalorder %s1256_s24, %s1250_s11 }
  0x61   : > { %v1031_v25 = vpack.c.bf16 %v364_v24, %v363_v23  ;;  %v342_v27 = vld [vmem:[%s1533_s8 + $0x48] sm:$0xff]  ;;  %v343_v29 = vld [vmem:[%s1533_s8 + $0x50] sm:$0xff]  ;;  %v336_v30 = vld [vmem:[%s1533_s8 + $0x18] sm:$0xff]  ;;  %p1253_p8 = pneg %p1252_p6 }
  0x62   : > { %1010 = vmatpush3.bf16.msra.mxu0 %v1007_v5  ;;  %1044 = vmatpush3.bf16.msra.mxu1 %v1007_v5  ;;  %v344_v31 = vld [vmem:[%s1533_s8 + $0x58] sm:$0xff]  ;;  %v337_v32 = vld [vmem:[%s1533_s8 + $0x20] sm:$0xff]  ;;  %v338_v34 = vld [vmem:[%s1533_s8 + $0x28] sm:$0xff]  ;;  %p1259_p0 = por %p1258_p10, %p1257_p12 }
  0x63   : > { %1012 = vmatprep.subr.bf16.mxu0 %v1011_v8  ;;  %1037 = vmatprep.subr.bf16.mxu1 %v1011_v8  ;;  %v345_v33 = vld [vmem:[%s1533_s8 + $0x60] sm:$0xff]  ;;  %v346_v35 = vld [vmem:[%s1533_s8 + $0x68] sm:$0xff]  ;;  %v339_v36 = vld [vmem:[%s1533_s8 + $0x30] sm:$0xff] }
  0x64   : > { %v347_v37 = vld [vmem:[%s1533_s8 + $0x70] sm:$0xff]  ;;  %v340_v38 = vld [vmem:[%s1533_s8 + $0x38] sm:$0xff]  ;;  %v1562_v40 = vld [vmem:[%s1742_s2] ss:$0 sm:$0xff]  ;;  %p1260_p5 = pnand %p1259_p0, %p1253_p8 }
  0x65   : > { %v348_v39 = vld [vmem:[%s1533_s8 + $0x78] sm:$0xff]  ;;  %v1567_v42 = vld [vmem:[%s1743_s3] ss:$0 sm:$0xff] }
  0x66   : > { %1014 = vmatpush3.bf16.msra.mxu0 %v1011_v8  ;;  %1045 = vmatpush3.bf16.msra.mxu1 %v1011_v8 }
  0x67   : > { %1016 = vmatprep.subr.bf16.mxu0 %v1015_v13  ;;  %1038 = vmatprep.subr.bf16.mxu1 %v1015_v13 }
  0x6a   : > { %1018 = vmatpush3.bf16.msra.mxu0 %v1015_v13  ;;  %1046 = vmatpush3.bf16.msra.mxu1 %v1015_v13 }
  0x6b   : > { %1020 = vmatprep.subr.bf16.mxu0 %v1019_v16  ;;  %1039 = vmatprep.subr.bf16.mxu1 %v1019_v16 }
  0x6e   : > { %1022 = vmatpush3.bf16.msra.mxu0 %v1019_v16  ;;  %1047 = vmatpush3.bf16.msra.mxu1 %v1019_v16 }
  0x6f   : > { %1024 = vmatprep.subr.bf16.mxu0 %v1023_v19  ;;  %1040 = vmatprep.subr.bf16.mxu1 %v1023_v19 }
  0x72   : > { %1026 = vmatpush3.bf16.msra.mxu0 %v1023_v19  ;;  %1048 = vmatpush3.bf16.msra.mxu1 %v1023_v19 }
  0x73   : > { %1028 = vmatprep.subr.bf16.mxu0 %v1027_v22  ;;  %1041 = vmatprep.subr.bf16.mxu1 %v1027_v22 }
  0x76   : > { %1030 = vmatpush3.bf16.msra.mxu0 %v1027_v22  ;;  %1049 = vmatpush3.bf16.msra.mxu1 %v1027_v22 }
  0x77   : > { %1032 = vmatprep.subr.bf16.mxu0 %v1031_v25  ;;  %1042 = vmatprep.subr.bf16.mxu1 %v1031_v25 }
  0x7a   : > { %1034 = vmatpush3.bf16.msra.mxu0 %v1031_v25  ;;  %1050 = vmatpush3.bf16.msra.mxu1 %v1031_v25 }
  0x7d   : > { %980 = vmatmul.mubr.f32.vlgmr.msra.gmra.mrb[0].mxu0 %v334_v26  ;;  %992 = vmatmul.mubr.f32.vlgmr.msra.gmra.mrb[0].mxu1 %v342_v27 }
  0x7e   : > { %982 = vmatprep.mubr.f32.mxu0 %v335_v28  ;;  %994 = vmatprep.mubr.f32.mxu1 %v343_v29 }
  0x81   : > { %983 = vmatmul.mubr.f32.gmra.mrb[2].mxu0 %v336_v30  ;;  %995 = vmatmul.mubr.f32.gmra.mrb[2].mxu1 %v344_v31 }
  0x82   : > { %985 = vmatprep.mubr.f32.mxu0 %v337_v32  ;;  %997 = vmatprep.mubr.f32.mxu1 %v345_v33 }
  0x85   : > { %986 = vmatmul.mubr.f32.gmra.mrb[4].mxu0 %v338_v34  ;;  %998 = vmatmul.mubr.f32.gmra.mrb[4].mxu1 %v346_v35 }
  0x86   : > { %988 = vmatprep.mubr.f32.mxu0 %v339_v36  ;;  %1000 = vmatprep.mubr.f32.mxu1 %v347_v37 }
  0x89   : > { %989 = vmatmul.mubr.f32.gmra.mrb[6].mxu0 %v340_v38  ;;  %1001 = vmatmul.mubr.f32.gmra.mrb[6].mxu1 %v348_v39 }
 0x150   : > { %v981_v41 = vpop.f32.mrb[0].mxu0  ;;  %v993_v43 = vpop.f32.mrb[0].mxu1 }
 0x151   : > { %v569_v44 = vmul.f32 %v981_v41, %v1562_v40  ;;  %v577_v45 = vmul.f32 %v993_v43, %v1562_v40  ;;  %v431_v46 = vpop.f32.mrb[1].mxu0  ;;  %v471_v47 = vpop.f32.mrb[1].mxu1 }
 0x152   : > { %v568_v48 = vmul.f32 %v1562_v40, %v431_v46  ;;  %v576_v49 = vmul.f32 %v1562_v40, %v471_v47 }
 0x153   : > { %v1574_v50 = vadd.f32 %v1567_v42, %v569_v44  ;;  %v1577_v51 = vadd.f32 %v1567_v42, %v577_v45 }
 0x154   : > { %v1580_v52 = vadd.f32 %v1567_v42, %v568_v48  ;;  %v1583_v53 = vadd.f32 %v1567_v42, %v576_v49  ;;  %v984_v54 = vpop.f32.mrb[2].mxu0  ;;  %v996_v55 = vpop.f32.mrb[2].mxu1 }
 0x155   : > { %v893_v56 = vmul.f32 -1.442695, %v1574_v50  ;;  %v901_v57 = vmul.f32 -1.442695, %v1577_v51  ;;  %v571_v58 = vmul.f32 %v984_v54, %v1562_v40  ;;  %v579_v59 = vmul.f32 %v996_v55, %v1562_v40  ;;  %v441_v60 = vpop.f32.mrb[3].mxu0  ;;  %v481_v61 = vpop.f32.mrb[3].mxu1 }
 0x156   : > { %v892_v62 = vmul.f32 -1.442695, %v1580_v52  ;;  %v900_v63 = vmul.f32 -1.442695, %v1583_v53  ;;  %v570_v0 = vmul.f32 %v1562_v40, %v441_v60  ;;  %v578_v1 = vmul.f32 %v1562_v40, %v481_v61 }
 0x157   : > { %1128 = vpow2.f32 %v893_v56  ;;  %v1594_v2 = vadd.f32 %v1567_v42, %v571_v58  ;;  %v1597_v3 = vadd.f32 %v1567_v42, %v579_v59 }
 0x158   : > { %1130 = vpow2.f32 %v901_v57  ;;  %v1600_v4 = vadd.f32 %v1567_v42, %v570_v0  ;;  %v1603_v5 = vadd.f32 %v1567_v42, %v578_v1  ;;  %v987_v6 = vpop.f32.mrb[4].mxu0  ;;  %v999_v7 = vpop.f32.mrb[4].mxu1 }
 0x159   : > { %1132 = vpow2.f32 %v892_v62  ;;  %v895_v8 = vmul.f32 -1.442695, %v1594_v2  ;;  %v903_v9 = vmul.f32 -1.442695, %v1597_v3  ;;  %v573_v10 = vmul.f32 %v987_v6, %v1562_v40  ;;  %v451_v11 = vpop.f32.mrb[5].mxu0  ;;  %v491_v12 = vpop.f32.mrb[5].mxu1 }
 0x15a   : > { %1134 = vpow2.f32 %v900_v63  ;;  %v894_v13 = vmul.f32 -1.442695, %v1600_v4  ;;  %v902_v14 = vmul.f32 -1.442695, %v1603_v5  ;;  %v581_v15 = vmul.f32 %v999_v7, %v1562_v40 }
 0x15b   : > { %1136 = vpow2.f32 %v895_v8  ;;  %v1612_v16 = vadd.f32 %v1567_v42, %v573_v10  ;;  %v572_v17 = vmul.f32 %v1562_v40, %v451_v11  ;;  %v580_v18 = vmul.f32 %v1562_v40, %v491_v12 }
 0x15c   : > { %1138 = vpow2.f32 %v903_v9  ;;  %v1617_v19 = vadd.f32 %v1567_v42, %v581_v15  ;;  %v990_v20 = vpop.f32.mrb[6].mxu0  ;;  %v1002_v21 = vpop.f32.mrb[6].mxu1 }
 0x15d   : > { %1140 = vpow2.f32 %v894_v13  ;;  %v897_v22 = vmul.f32 -1.442695, %v1612_v16  ;;  %v1621_v23 = vadd.f32 %v1567_v42, %v572_v17  ;;  %v1624_v24 = vadd.f32 %v1567_v42, %v580_v18  ;;  %v461_v25 = vpop.f32.mrb[7].mxu0  ;;  %v501_v26 = vpop.f32.mrb[7].mxu1 }
 0x15e   : > { %1142 = vpow2.f32 %v902_v14  ;;  %v905_v27 = vmul.f32 -1.442695, %v1617_v19  ;;  %v575_v37 = vmul.f32 %v990_v20, %v1562_v40  ;;  %v583_v41 = vmul.f32 %v1002_v21, %v1562_v40 }
 0x15f   : > { %1144 = vpow2.f32 %v897_v22  ;;  %v896_v28 = vmul.f32 -1.442695, %v1621_v23  ;;  %v904_v29 = vmul.f32 -1.442695, %v1624_v24  ;;  %v574_v45 = vmul.f32 %v1562_v40, %v461_v25 }
 0x160   : > { %1146 = vpow2.f32 %v905_v27  ;;  %v582_v48 = vmul.f32 %v1562_v40, %v501_v26  ;;  %v1634_v55 = vadd.f32 %v1567_v42, %v575_v37  ;;  %v1637_v58 = vadd.f32 %v1567_v42, %v583_v41 }
 0x161   : > { %v1129_v30 = vpop.eup %1128  ;;  %1148 = vpow2.f32 %v896_v28  ;;  %v1640_v61 = vadd.f32 %v1567_v42, %v574_v45 }
 0x162   : > { %v1131_v31 = vpop.eup %1130  ;;  %v656_v32 = vadd.f32 1.0, %v1129_v30  ;;  %1150 = vpow2.f32 %v904_v29  ;;  %v1643_v63 = vadd.f32 %v1567_v42, %v582_v48  ;;  %v899_v6 = vmul.f32 -1.442695, %v1634_v55 }
 0x163   : > { %v1133_v33 = vpop.eup %1132  ;;  %v664_v34 = vadd.f32 1.0, %v1131_v31  ;;  %v907_v8 = vmul.f32 -1.442695, %v1637_v58  ;;  %v898_v10 = vmul.f32 -1.442695, %v1640_v61 }
 0x164   : > { %v1135_v35 = vpop.eup %1134  ;;  %1152 = vrcp.f32 %v656_v32  ;;  %v655_v36 = vadd.f32 1.0, %v1133_v33  ;;  %v906_v42 = vmul.f32 -1.442695, %v1643_v63 }
 0x165   : > { %v1137_v38 = vpop.eup %1136  ;;  %1154 = vrcp.f32 %v664_v34  ;;  %v663_v39 = vadd.f32 1.0, %v1135_v35 }
 0x166   : > { %v1139_v43 = vpop.eup %1138  ;;  %1156 = vrcp.f32 %v655_v36  ;;  %v658_v44 = vadd.f32 1.0, %v1137_v38 }
 0x167   : > { %v1141_v46 = vpop.eup %1140  ;;  %1158 = vrcp.f32 %v663_v39  ;;  %v666_v47 = vadd.f32 1.0, %v1139_v43 }
 0x168   : > { %v1143_v49 = vpop.eup %1142  ;;  %1160 = vrcp.f32 %v658_v44  ;;  %v657_v54 = vadd.f32 1.0, %v1141_v46 }
 0x169   : > { %v1145_v56 = vpop.eup %1144  ;;  %1162 = vrcp.f32 %v666_v47  ;;  %v665_v57 = vadd.f32 1.0, %v1143_v49 }
 0x16a   : > { %v1147_v59 = vpop.eup %1146  ;;  %1164 = vrcp.f32 %v657_v54  ;;  %v660_v60 = vadd.f32 1.0, %v1145_v56 }
 0x16b   : > { %v1149_v62 = vpop.eup %1148  ;;  %1166 = vrcp.f32 %v665_v57  ;;  %v668_v40 = vadd.f32 1.0, %v1147_v59 }
 0x16c   : > { %v1151_v0 = vpop.eup %1150  ;;  %1168 = vrcp.f32 %v660_v60  ;;  %v659_v1 = vadd.f32 1.0, %v1149_v62 }
 0x16d   : > { %1170 = vrcp.f32 %v668_v40  ;;  %v667_v7 = vadd.f32 1.0, %v1151_v0 }
 0x16e   : > { %v1153_v9 = vpop.eup %1152  ;;  %1172 = vrcp.f32 %v659_v1 }
 0x16f   : > { %v1155_v11 = vpop.eup %1154  ;;  %v704_v12 = vmul.f32 %v1153_v9, %v1574_v50  ;;  %1174 = vrcp.f32 %v667_v7 }
 0x170   : > { %v1157_v13 = vpop.eup %1156  ;;  %v712_v14 = vmul.f32 %v1155_v11, %v1577_v51  ;;  %1176 = vpow2.f32 %v899_v6 }
 0x171   : > { %v1159_v15 = vpop.eup %1158  ;;  %720 = vst [vmem:[%s1653_s21 + $0x8] sm:$0xff] %v704_v12  ;;  %v703_v17 = vmul.f32 %v1157_v13, %v1580_v52  ;;  %1178 = vpow2.f32 %v907_v8 }
 0x172   : > { %v1161_v50 = vpop.eup %1160  ;;  %728 = vst [vmem:[%s1653_s21 + $0x48] sm:$0xff] %v712_v14  ;;  %v711_v18 = vmul.f32 %v1159_v15, %v1583_v53  ;;  %1180 = vpow2.f32 %v898_v10 }
 0x173   : > { %v1163_v51 = vpop.eup %1162  ;;  %719 = vst [vmem:[%s1653_s21] sm:$0xff] %v703_v17  ;;  %v706_v20 = vmul.f32 %v1161_v50, %v1594_v2  ;;  %1182 = vpow2.f32 %v906_v42 }
 0x174   : > { %v1165_v21 = vpop.eup %1164  ;;  %727 = vst [vmem:[%s1653_s21 + $0x40] sm:$0xff] %v711_v18  ;;  %v714_v22 = vmul.f32 %v1163_v51, %v1597_v3 }
 0x175   : > { %v1167_v52 = vpop.eup %1166  ;;  %722 = vst [vmem:[%s1653_s21 + $0x18] sm:$0xff] %v706_v20  ;;  %v705_v25 = vmul.f32 %v1165_v21, %v1600_v4 }
 0x176   : > { %v1169_v26 = vpop.eup %1168  ;;  %730 = vst [vmem:[%s1653_s21 + $0x58] sm:$0xff] %v714_v22  ;;  %v713_v53 = vmul.f32 %v1167_v52, %v1603_v5 }
 0x177   : > { %v1171_v27 = vpop.eup %1170  ;;  %721 = vst [vmem:[%s1653_s21 + $0x10] sm:$0xff] %v705_v25  ;;  %v708_v2 = vmul.f32 %v1169_v26, %v1612_v16 }
 0x178   : > { %v1173_v28 = vpop.eup %1172  ;;  %729 = vst [vmem:[%s1653_s21 + $0x50] sm:$0xff] %v713_v53  ;;  %v716_v29 = vmul.f32 %v1171_v27, %v1617_v19 }
 0x179   : > { %v1175_v3 = vpop.eup %1174  ;;  %724 = vst [vmem:[%s1653_s21 + $0x28] sm:$0xff] %v708_v2  ;;  %v707_v30 = vmul.f32 %v1173_v28, %v1621_v23 }
 0x17a   : > { %v1177_v31 = vpop.eup %1176  ;;  %732 = vst [vmem:[%s1653_s21 + $0x68] sm:$0xff] %v716_v29  ;;  %v715_v4 = vmul.f32 %v1175_v3, %v1624_v24 }
 0x17b   : > { %v1179_v5 = vpop.eup %1178  ;;  %723 = vst [vmem:[%s1653_s21 + $0x20] sm:$0xff] %v707_v30  ;;  %v662_v32 = vadd.f32 1.0, %v1177_v31 }
 0x17c   : > { %v1181_v33 = vpop.eup %1180  ;;  %731 = vst [vmem:[%s1653_s21 + $0x60] sm:$0xff] %v715_v4  ;;  %v670_v16 = vadd.f32 1.0, %v1179_v5 }
 0x17d   : > { %v1183_v34 = vpop.eup %1182  ;;  %1184 = vrcp.f32 %v662_v32  ;;  %v661_v19 = vadd.f32 1.0, %v1181_v33 }
 0x17e   : > { %1186 = vrcp.f32 %v670_v16  ;;  %v669_v35 = vadd.f32 1.0, %v1183_v34 }
 0x17f   : > { %1188 = vrcp.f32 %v661_v19 }
 0x180   : > { %1190 = vrcp.f32 %v669_v35 }
 0x187   : > { %v1185_v23 = vpop.eup %1184 }
 0x188   : > { %v1187_v24 = vpop.eup %1186  ;;  %v710_v36 = vmul.f32 %v1185_v23, %v1634_v55 }
 0x189   : > { %v1189_v37 = vpop.eup %1188  ;;  %v718_v38 = vmul.f32 %v1187_v24, %v1637_v58 }
 0x18a   : > { %v1191_v39 = vpop.eup %1190  ;;  %726 = vst [vmem:[%s1653_s21 + $0x38] sm:$0xff] %v710_v36  ;;  %v709_v41 = vmul.f32 %v1189_v37, %v1640_v61 }
 0x18b   : > { %734 = vst [vmem:[%s1653_s21 + $0x78] sm:$0xff] %v718_v38  ;;  %v717_v43 = vmul.f32 %v1191_v39, %v1643_v63 }
 0x18c   : > { %725 = vst [vmem:[%s1653_s21 + $0x30] sm:$0xff] %v709_v41 }
 0x18d   : > { %733 = vst [vmem:[%s1653_s21 + $0x70] sm:$0xff] %v717_v43 }
 0x18e   : > { %1263 = shalt.err (!%p1260_p5)
}
 0x18f   : > { %s1264_s8 = scalar_lea.hbm %s1686_s9, 2048  ;;  %s1268_s27 = scalar_lea.hbm %s1744_s4, 8192 }
 0x190   : > { %p1265_p9 = scmp.ne.s32.totalorder %s1686_s9, %s1264_s8  ;;  %p1269_p3 = scmp.lt.u32.totalorder %s1686_s9, %s1744_s4 }
 0x191   : > { %p1270_p7 = scmp.lt.u32.totalorder %s1268_s27, %s1264_s8  ;;  %p1272_p4 = scmp.lt.u32.totalorder %s1264_s8, %s1686_s9 }
 0x192   : > { %p1266_p1 = pnand %p1265_p9, %p1468_p11 }
 0x193   : > { %p1271_p13 = por %p1270_p7, %p1269_p3 }
 0x194   : > { %p1267_p2 = pneg %p1266_p1 }
 0x195   : > { %p1273_p6 = por %p1272_p4, %p1271_p13 }
 0x197   : > { %p1274_p8 = pnand %p1273_p6, %p1267_p2 }
 0x199   : > { %1277 = shalt.err (!%p1274_p8)
}
 0x19a   : > { %s1343_s22 = smov 128   ;;  %s1344_s6 = smov 8  }
 0x19b   : > { %1057 = dma.vmem_to_hbm [thread:$0]  (%p1468_p11), %s1688_s28, 2048, %s1686_s9, %s736_s18, %s1343_s22, %s1343_s22, %s1344_s6  }
 0x19c PF: > { %p1074_p12 = scmp.ge.s32.totalorder %s1336_s20, 2  ;;  %s765_s29 = sand.u32 1, %s1316_s15  }
 0x19d   : > { %p1762_p10 = scmp.ne.s32.totalorder %s1752_s26, 0  ;;  %s766_s11 = scalar_lea.sflag [#allocation5], %s765_s29 }
 0x19f   : > { %p1068_p0 = pnand %p1074_p12, %p1762_p10 }
 0x1a1   : > { %1311 = dma.done.wait (!%p1068_p0), %s766_s11, 2048  }
 0x1a2   : > { %1313 = vsyncadd (!%p1068_p0), %s766_s11, 4294965248  ;;  %s21_s20 = sadd.s32 1, %s1336_s20   ;;  %s1763_s15 = smov %s1320_s16 }
 0x1a3   : > { %p18_p5 = scmp.ge.s32.totalorder %s21_s20, 6   ;;  %s1764_s16 = smov %s1324_s17 }
 0x1a4   : > { %s1765_s17 = smov %s1477_s10  ;;  %s1766_s18 = smov %s1332_s19 }
 0x1a5   : > { %s1767_s19 = smov %s1769_s5  ;;  %20 = sbr.rel (!%p18_p5) target bundleno = 7 (0x7), region = 100 }
 0x1ac   :  { %771 = vsyncpa [#allocation4], 1 }
 0x1ad   :  { %773 = vsyncpa [#allocation4 + $0x1], 1 }
 0x1ae   :  { %774 = vsyncpa [#allocation7], 1 }
 0x1af   :  { %775 = vsyncpa [#allocation5], 1 }
 0x1b0   :  { %777 = vsyncpa [#allocation5 + $0x1], 1 }

</bundles_post_ra>
